<compile_context>
chip_gen: v7x
topology: tpu7x:2x2x1
jax: 0.10.0
libtpu: 0.0.40
codegen_flags: <defaults>
</compile_context>

<pallas_src>
import functools

import jax
import jax.numpy as jnp
from jax.experimental import pallas as pl
from jax.experimental.pallas import tpu as pltpu

BN_EPS = 1e-5     # torch.nn.BatchNorm1d default eps
COS_EPS = 1e-8    # torch.nn.CosineSimilarity default eps


# ----------------------------- fused Pallas kernel ---------------------------

def _fused_simsam_loss_kernel(x_ref, w_ref, o_ref, *,
                              batch, embed_dim, dim, pre_dim):
    """Whole ConLoss('simsam') forward in one gridless kernel.

    x_ref: (2B, E) f32 — view0 rows then view1 rows (row b split is
           sublane-aligned for f32 when b % 8 == 0).
    w_ref: (R, D) bf16 — packed weights: sw1|sw2|sw3|pw1(col-padded)|pw2|b2|pad
    o_ref: (1, 1) f32 — scalar loss.
    """
    b = batch
    inv_b = 1.0 / b

    # Static row offsets into the packed weight buffer. For E=32, D=64, P=16
    # all offsets are multiples of the bf16 sublane tile (16) -> clean slices.
    r1 = embed_dim            # end of sw1
    r2 = r1 + dim             # end of sw2
    r3 = r2 + dim             # end of sw3
    r4 = r3 + dim             # end of pw1
    r5 = r4 + pre_dim         # end of pw2; bias row follows

    sw1 = w_ref[0:r1, :]                                  # (E, D) bf16
    sw2 = w_ref[r1:r2, :]                                 # (D, D)
    sw3 = w_ref[r2:r3, :]                                 # (D, D)
    pw1 = w_ref[r3:r4, 0:pre_dim]                         # (D, P) (pad cols never read)
    pw2 = w_ref[r4:r5, :]                                 # (P, D)
    pb2 = w_ref[r5:r5 + 1, :].astype(jnp.float32)         # (1, D)

    def linear_bn(x, w, relu):
        # bf16 operands -> single MXU pass; f32 accumulate; BN math in f32.
        y = jnp.dot(x.astype(jnp.bfloat16), w,
                    preferred_element_type=jnp.float32)   # (B, n)
        # One-pass BN stats (sum / sum-of-squares), single normalize pass.
        s1 = jnp.sum(y, axis=0, keepdims=True)
        s2 = jnp.sum(y * y, axis=0, keepdims=True)
        mean = s1 * inv_b
        var = s2 * inv_b - mean * mean                    # biased (torch train mode)
        y = (y - mean) * jax.lax.rsqrt(var + BN_EPS)
        if relu:
            y = jnp.maximum(y, 0.0)
        return y

    def tower(x):
        # SimSamMLP: 3x [Linear(no bias)+BN(+ReLU)]; last BN affine=False, no ReLU.
        h = linear_bn(x, sw1, relu=True)
        h = linear_bn(h, sw2, relu=True)
        z = linear_bn(h, sw3, relu=False)                 # (B, D)
        # PreMLP: Linear(no bias)+BN+ReLU, then Linear(+bias).
        h = linear_bn(z, pw1, relu=True)                  # (B, P)
        p = (jnp.dot(h.astype(jnp.bfloat16), pw2,
                     preferred_element_type=jnp.float32) + pb2)   # (B, D)
        return z, p

    x = x_ref[...].astype(jnp.float32)                    # (2B, E)
    # Two independent per-view chains (ILP; no reshape/concat relayouts).
    z1, p1 = tower(x[:b])
    z2, p2 = tower(x[b:])

    def cos_sum(a, c):
        d_ = jnp.sum(a * c, axis=-1, keepdims=True)       # (B, 1)
        nn2 = (jnp.sum(a * a, axis=-1, keepdims=True)
               * jnp.sum(c * c, axis=-1, keepdims=True))
        # == 1 / max(|a|*|c|, eps): torch clamps the PRODUCT of the norms.
        inv = jax.lax.rsqrt(jnp.maximum(nn2, COS_EPS * COS_EPS))
        return jnp.sum(d_ * inv, axis=0, keepdims=True)   # (1, 1)

    # Fold the mean (1/b) and the -0.5 into one scalar multiply.
    loss = (cos_sum(p1, z2) + cos_sum(p2, z1)) * (-0.5 * inv_b)   # (1, 1)
    o_ref[...] = loss


# ----------------------------- packing / wrapper ------------------------------

def pack_params(simsam_params, pre_params):
    """Pack 6 weights + bias into ONE bf16 (rows, dim) buffer (single DMA).

    Row layout: sw1 | sw2 | sw3 | pw1 (cols padded to dim) | pw2 | b2 | pad.
    Done once outside the loss; the kernel slices it at static offsets (free).
    """
    d = simsam_params["w3"].shape[1]

    def pad_cols(w):
        return jnp.pad(w, ((0, 0), (0, d - w.shape[1])))

    pieces = [simsam_params["w1"], simsam_params["w2"], simsam_params["w3"],
              pad_cols(pre_params["w1"]), pre_params["w2"],
              pre_params["b2"].reshape(1, d)]
    buf = jnp.concatenate(pieces, axis=0)
    pad_rows = (-buf.shape[0]) % 16          # round up to the bf16 sublane tile
    buf = jnp.pad(buf, ((0, pad_rows), (0, 0)))
    return buf.astype(jnp.bfloat16)


def con_loss_simsam(feature, packed_w, *, embed_dim, dim, pre_dim):
    two, b, e = feature.shape
    assert two == 2 and e == embed_dim
    assert b % 8 == 0, "row-b view split of the f32 input must be sublane-aligned"
    x = feature.reshape(2 * b, e)            # contiguous -> free layout change

    kernel = functools.partial(_fused_simsam_loss_kernel, batch=b,
                               embed_dim=embed_dim, dim=dim, pre_dim=pre_dim)
    vmem = pl.BlockSpec(memory_space=pltpu.MemorySpace.VMEM)
    out = pl.pallas_call(
        kernel,
        out_shape=jax.ShapeDtypeStruct((1, 1), jnp.float32),
        in_specs=[vmem, vmem],               # 2 inputs total: x and packed weights
        out_specs=vmem,                      # (1,1) VMEM scalar block (see header)
    )(x, packed_w)
    return out[0, 0]


# ----------------------------- params / reference -----------------------------

def init_params(key, embed_dim, dim, pre_dim):
    """Deterministic synthetic init (scaled normals ~ 1/sqrt(fan_in))."""
    ks = jax.random.split(key, 5)

    def w(k, fan_in, fan_out):
        return (jax.random.normal(k, (fan_in, fan_out), jnp.float32)
                / jnp.sqrt(jnp.float32(fan_in)))

    simsam = {"w1": w(ks[0], embed_dim, dim),
              "w2": w(ks[1], dim, dim),
              "w3": w(ks[2], dim, dim)}
    pre = {"w1": w(ks[3], dim, pre_dim),
           "w2": w(ks[4], pre_dim, dim),
           # TODO(synk): torch Linear bias init is uniform; zeros is our deterministic choice.
           "b2": jnp.zeros((dim,), jnp.float32)}
    return simsam, pre


def _reference_loss(feature, simsam_params, pre_params, *, bf16_matmul):
    """Pure-JAX reference. bf16_matmul=True mirrors the kernel's MXU quantization."""
    hp = jax.lax.Precision.HIGHEST

    def mm(a, w):
        if bf16_matmul:
            return jnp.dot(a.astype(jnp.bfloat16), w.astype(jnp.bfloat16),
                           preferred_element_type=jnp.float32)
        return jnp.dot(a, w, precision=hp)

    def bn(y):
        mean = jnp.mean(y, axis=0, keepdims=True)
        var = jnp.mean((y - mean) ** 2, axis=0, keepdims=True)
        return (y - mean) / jnp.sqrt(var + BN_EPS)

    def simsam(x, p):
        h = jnp.maximum(bn(mm(x, p["w1"])), 0.0)
        h = jnp.maximum(bn(mm(h, p["w2"])), 0.0)
        return bn(mm(h, p["w3"]))

    def pre(x, p):
        h = jnp.maximum(bn(mm(x, p["w1"])), 0.0)
        bias = p["b2"]
        if bf16_matmul:
            bias = bias.astype(jnp.bfloat16).astype(jnp.float32)
        return mm(h, p["w2"]) + bias

    z1 = simsam(feature[0], simsam_params)
    z2 = simsam(feature[1], simsam_params)
    p1 = pre(z1, pre_params)
    p2 = pre(z2, pre_params)

    def cos(a, c):
        num = jnp.sum(a * c, axis=-1)
        den = jnp.maximum(jnp.linalg.norm(a, axis=-1) * jnp.linalg.norm(c, axis=-1),
                          COS_EPS)
        return num / den

    return -(jnp.mean(cos(p1, z2)) + jnp.mean(cos(p2, z1))) * 0.5


# ----------------------------- main --------------------------------------------

if __name__ == "__main__":
    # Small shapes consistent with the module structure:
    #   embedding_dim (MLP input) = 32, dim (projection) = 64, pre_dim = 16, batch = 8
    B, EMBED, DIM, PRE = 8, 32, 64, 16

    key = jax.random.PRNGKey(0)
    k_feat, k_param = jax.random.split(key)

    # feature = [view0, view1], each (B, EMBED) -> stacked as (2, B, EMBED)
    feature = jax.random.normal(k_feat, (2, B, EMBED), jnp.float32)
    simsam_params, pre_params = init_params(k_param, EMBED, DIM, PRE)
    packed_w = pack_params(simsam_params, pre_params)   # done ONCE, outside the loss

    loss_fn = jax.jit(functools.partial(con_loss_simsam,
                                        embed_dim=EMBED, dim=DIM, pre_dim=PRE))
    loss = jax.block_until_ready(loss_fn(feature, packed_w))

    # Tight check vs a reference that mirrors the kernel's bf16-MXU quantization,
    # plus a sanity bound vs the full-f32 (PyTorch-semantics) reference.
    ref_bf16 = _reference_loss(feature, simsam_params, pre_params, bf16_matmul=True)
    ref_f32 = _reference_loss(feature, simsam_params, pre_params, bf16_matmul=False)

    assert loss.shape == () and bool(jnp.isfinite(loss))
    assert abs(float(loss) - float(ref_bf16)) < 2e-3, (float(loss), float(ref_bf16))
    assert abs(float(loss) - float(ref_f32)) < 2e-2, (float(loss), float(ref_f32))
    print("KERNEL_OK")
</pallas_src>

<mosaic_0001>
module attributes {stable_mosaic.version = 11 : i64} {
  func.func @_fused_simsam_loss_kernel(%arg0: memref<16x32xf32, #tpu.memory_space<vmem>>, %arg1: memref<256x64xbf16, #tpu.memory_space<vmem>>, %arg2: memref<1x1xf32, #tpu.memory_space<vmem>>) attributes {dimension_semantics = [], scalar_prefetch = 0 : i64, scratch_operands = 0 : i64, tpu.core_type = #tpu.core_type<tc>} {
    %c0 = arith.constant 0 : index
    %c0_0 = arith.constant 0 : index
    %0 = vector.load %arg1[%c0, %c0_0] : memref<256x64xbf16, #tpu.memory_space<vmem>>, vector<32x64xbf16>
    %c32 = arith.constant 32 : index
    %c0_1 = arith.constant 0 : index
    %1 = vector.load %arg1[%c32, %c0_1] : memref<256x64xbf16, #tpu.memory_space<vmem>>, vector<64x64xbf16>
    %c96 = arith.constant 96 : index
    %c0_2 = arith.constant 0 : index
    %2 = vector.load %arg1[%c96, %c0_2] : memref<256x64xbf16, #tpu.memory_space<vmem>>, vector<64x64xbf16>
    %c160 = arith.constant 160 : index
    %c0_3 = arith.constant 0 : index
    %3 = vector.load %arg1[%c160, %c0_3] : memref<256x64xbf16, #tpu.memory_space<vmem>>, vector<64x16xbf16>
    %c224 = arith.constant 224 : index
    %c0_4 = arith.constant 0 : index
    %4 = vector.load %arg1[%c224, %c0_4] : memref<256x64xbf16, #tpu.memory_space<vmem>>, vector<16x64xbf16>
    %c240 = arith.constant 240 : index
    %c0_5 = arith.constant 0 : index
    %5 = vector.load %arg1[%c240, %c0_5] : memref<256x64xbf16, #tpu.memory_space<vmem>>, vector<1x64xbf16>
    %6 = arith.extf %5 : vector<1x64xbf16> to vector<1x64xf32>
    %c0_6 = arith.constant 0 : index
    %c0_7 = arith.constant 0 : index
    %7 = vector.load %arg0[%c0_6, %c0_7] : memref<16x32xf32, #tpu.memory_space<vmem>>, vector<16x32xf32>
    %8 = vector.extract_strided_slice %7 {offsets = [0, 0], sizes = [8, 32], strides = [1, 1]} : vector<16x32xf32> to vector<8x32xf32>
    %9 = arith.truncf %8 : vector<8x32xf32> to vector<8x32xbf16>
    %cst = arith.constant dense<0.000000e+00> : vector<8x64xf32>
    %10 = tpu.matmul %9, %0, %cst {dimension_numbers = #tpu.dot_dimension_numbers<[1], [0], [0], [1], [0, 0, 1, 1], [], []>} : vector<8x32xbf16>, vector<32x64xbf16>, vector<8x64xf32> -> vector<8x64xf32>
    %cst_8 = arith.constant dense<0.000000e+00> : vector<64xf32>
    %11 = vector.multi_reduction <add>, %10, %cst_8 [0] : vector<8x64xf32> to vector<64xf32>
    %12 = vector.shape_cast %11 : vector<64xf32> to vector<1x64xf32>
    %13 = arith.mulf %10, %10 : vector<8x64xf32>
    %cst_9 = arith.constant dense<0.000000e+00> : vector<64xf32>
    %14 = vector.multi_reduction <add>, %13, %cst_9 [0] : vector<8x64xf32> to vector<64xf32>
    %15 = vector.shape_cast %14 : vector<64xf32> to vector<1x64xf32>
    %cst_10 = arith.constant 1.250000e-01 : f32
    %16 = vector.broadcast %cst_10 : f32 to vector<1x64xf32>
    %17 = arith.mulf %12, %16 : vector<1x64xf32>
    %cst_11 = arith.constant 1.250000e-01 : f32
    %18 = vector.broadcast %cst_11 : f32 to vector<1x64xf32>
    %19 = arith.mulf %15, %18 : vector<1x64xf32>
    %20 = arith.mulf %17, %17 : vector<1x64xf32>
    %21 = arith.subf %19, %20 : vector<1x64xf32>
    %22 = vector.broadcast %17 : vector<1x64xf32> to vector<8x64xf32>
    %23 = arith.subf %10, %22 : vector<8x64xf32>
    %cst_12 = arith.constant 9.99999974E-6 : f32
    %24 = vector.broadcast %cst_12 : f32 to vector<1x64xf32>
    %25 = arith.addf %21, %24 : vector<1x64xf32>
    %26 = math.rsqrt %25 : vector<1x64xf32>
    %27 = vector.broadcast %26 : vector<1x64xf32> to vector<8x64xf32>
    %28 = arith.mulf %23, %27 : vector<8x64xf32>
    %cst_13 = arith.constant 0.000000e+00 : f32
    %29 = vector.broadcast %cst_13 : f32 to vector<8x64xf32>
    %30 = arith.maximumf %28, %29 : vector<8x64xf32>
    %31 = arith.truncf %30 : vector<8x64xf32> to vector<8x64xbf16>
    %cst_14 = arith.constant dense<0.000000e+00> : vector<8x64xf32>
    %32 = tpu.matmul %31, %1, %cst_14 {dimension_numbers = #tpu.dot_dimension_numbers<[1], [0], [0], [1], [0, 0, 1, 1], [], []>} : vector<8x64xbf16>, vector<64x64xbf16>, vector<8x64xf32> -> vector<8x64xf32>
    %cst_15 = arith.constant dense<0.000000e+00> : vector<64xf32>
    %33 = vector.multi_reduction <add>, %32, %cst_15 [0] : vector<8x64xf32> to vector<64xf32>
    %34 = vector.shape_cast %33 : vector<64xf32> to vector<1x64xf32>
    %35 = arith.mulf %32, %32 : vector<8x64xf32>
    %cst_16 = arith.constant dense<0.000000e+00> : vector<64xf32>
    %36 = vector.multi_reduction <add>, %35, %cst_16 [0] : vector<8x64xf32> to vector<64xf32>
    %37 = vector.shape_cast %36 : vector<64xf32> to vector<1x64xf32>
    %cst_17 = arith.constant 1.250000e-01 : f32
    %38 = vector.broadcast %cst_17 : f32 to vector<1x64xf32>
    %39 = arith.mulf %34, %38 : vector<1x64xf32>
    %cst_18 = arith.constant 1.250000e-01 : f32
    %40 = vector.broadcast %cst_18 : f32 to vector<1x64xf32>
    %41 = arith.mulf %37, %40 : vector<1x64xf32>
    %42 = arith.mulf %39, %39 : vector<1x64xf32>
    %43 = arith.subf %41, %42 : vector<1x64xf32>
    %44 = vector.broadcast %39 : vector<1x64xf32> to vector<8x64xf32>
    %45 = arith.subf %32, %44 : vector<8x64xf32>
    %cst_19 = arith.constant 9.99999974E-6 : f32
    %46 = vector.broadcast %cst_19 : f32 to vector<1x64xf32>
    %47 = arith.addf %43, %46 : vector<1x64xf32>
    %48 = math.rsqrt %47 : vector<1x64xf32>
    %49 = vector.broadcast %48 : vector<1x64xf32> to vector<8x64xf32>
    %50 = arith.mulf %45, %49 : vector<8x64xf32>
    %cst_20 = arith.constant 0.000000e+00 : f32
    %51 = vector.broadcast %cst_20 : f32 to vector<8x64xf32>
    %52 = arith.maximumf %50, %51 : vector<8x64xf32>
    %53 = arith.truncf %52 : vector<8x64xf32> to vector<8x64xbf16>
    %cst_21 = arith.constant dense<0.000000e+00> : vector<8x64xf32>
    %54 = tpu.matmul %53, %2, %cst_21 {dimension_numbers = #tpu.dot_dimension_numbers<[1], [0], [0], [1], [0, 0, 1, 1], [], []>} : vector<8x64xbf16>, vector<64x64xbf16>, vector<8x64xf32> -> vector<8x64xf32>
    %cst_22 = arith.constant dense<0.000000e+00> : vector<64xf32>
    %55 = vector.multi_reduction <add>, %54, %cst_22 [0] : vector<8x64xf32> to vector<64xf32>
    %56 = vector.shape_cast %55 : vector<64xf32> to vector<1x64xf32>
    %57 = arith.mulf %54, %54 : vector<8x64xf32>
    %cst_23 = arith.constant dense<0.000000e+00> : vector<64xf32>
    %58 = vector.multi_reduction <add>, %57, %cst_23 [0] : vector<8x64xf32> to vector<64xf32>
    %59 = vector.shape_cast %58 : vector<64xf32> to vector<1x64xf32>
    %cst_24 = arith.constant 1.250000e-01 : f32
    %60 = vector.broadcast %cst_24 : f32 to vector<1x64xf32>
    %61 = arith.mulf %56, %60 : vector<1x64xf32>
    %cst_25 = arith.constant 1.250000e-01 : f32
    %62 = vector.broadcast %cst_25 : f32 to vector<1x64xf32>
    %63 = arith.mulf %59, %62 : vector<1x64xf32>
    %64 = arith.mulf %61, %61 : vector<1x64xf32>
    %65 = arith.subf %63, %64 : vector<1x64xf32>
    %66 = vector.broadcast %61 : vector<1x64xf32> to vector<8x64xf32>
    %67 = arith.subf %54, %66 : vector<8x64xf32>
    %cst_26 = arith.constant 9.99999974E-6 : f32
    %68 = vector.broadcast %cst_26 : f32 to vector<1x64xf32>
    %69 = arith.addf %65, %68 : vector<1x64xf32>
    %70 = math.rsqrt %69 : vector<1x64xf32>
    %71 = vector.broadcast %70 : vector<1x64xf32> to vector<8x64xf32>
    %72 = arith.mulf %67, %71 : vector<8x64xf32>
    %73 = arith.truncf %72 : vector<8x64xf32> to vector<8x64xbf16>
    %cst_27 = arith.constant dense<0.000000e+00> : vector<8x16xf32>
    %74 = tpu.matmul %73, %3, %cst_27 {dimension_numbers = #tpu.dot_dimension_numbers<[1], [0], [0], [1], [0, 0, 1, 1], [], []>} : vector<8x64xbf16>, vector<64x16xbf16>, vector<8x16xf32> -> vector<8x16xf32>
    %cst_28 = arith.constant dense<0.000000e+00> : vector<16xf32>
    %75 = vector.multi_reduction <add>, %74, %cst_28 [0] : vector<8x16xf32> to vector<16xf32>
    %76 = vector.shape_cast %75 : vector<16xf32> to vector<1x16xf32>
    %77 = arith.mulf %74, %74 : vector<8x16xf32>
    %cst_29 = arith.constant dense<0.000000e+00> : vector<16xf32>
    %78 = vector.multi_reduction <add>, %77, %cst_29 [0] : vector<8x16xf32> to vector<16xf32>
    %79 = vector.shape_cast %78 : vector<16xf32> to vector<1x16xf32>
    %cst_30 = arith.constant 1.250000e-01 : f32
    %80 = vector.broadcast %cst_30 : f32 to vector<1x16xf32>
    %81 = arith.mulf %76, %80 : vector<1x16xf32>
    %cst_31 = arith.constant 1.250000e-01 : f32
    %82 = vector.broadcast %cst_31 : f32 to vector<1x16xf32>
    %83 = arith.mulf %79, %82 : vector<1x16xf32>
    %84 = arith.mulf %81, %81 : vector<1x16xf32>
    %85 = arith.subf %83, %84 : vector<1x16xf32>
    %86 = vector.broadcast %81 : vector<1x16xf32> to vector<8x16xf32>
    %87 = arith.subf %74, %86 : vector<8x16xf32>
    %cst_32 = arith.constant 9.99999974E-6 : f32
    %88 = vector.broadcast %cst_32 : f32 to vector<1x16xf32>
    %89 = arith.addf %85, %88 : vector<1x16xf32>
    %90 = math.rsqrt %89 : vector<1x16xf32>
    %91 = vector.broadcast %90 : vector<1x16xf32> to vector<8x16xf32>
    %92 = arith.mulf %87, %91 : vector<8x16xf32>
    %cst_33 = arith.constant 0.000000e+00 : f32
    %93 = vector.broadcast %cst_33 : f32 to vector<8x16xf32>
    %94 = arith.maximumf %92, %93 : vector<8x16xf32>
    %95 = arith.truncf %94 : vector<8x16xf32> to vector<8x16xbf16>
    %cst_34 = arith.constant dense<0.000000e+00> : vector<8x64xf32>
    %96 = tpu.matmul %95, %4, %cst_34 {dimension_numbers = #tpu.dot_dimension_numbers<[1], [0], [0], [1], [0, 0, 1, 1], [], []>} : vector<8x16xbf16>, vector<16x64xbf16>, vector<8x64xf32> -> vector<8x64xf32>
    %97 = vector.broadcast %6 : vector<1x64xf32> to vector<8x64xf32>
    %98 = arith.addf %96, %97 : vector<8x64xf32>
    %99 = vector.extract_strided_slice %7 {offsets = [8, 0], sizes = [8, 32], strides = [1, 1]} : vector<16x32xf32> to vector<8x32xf32>
    %100 = arith.truncf %99 : vector<8x32xf32> to vector<8x32xbf16>
    %cst_35 = arith.constant dense<0.000000e+00> : vector<8x64xf32>
    %101 = tpu.matmul %100, %0, %cst_35 {dimension_numbers = #tpu.dot_dimension_numbers<[1], [0], [0], [1], [0, 0, 1, 1], [], []>} : vector<8x32xbf16>, vector<32x64xbf16>, vector<8x64xf32> -> vector<8x64xf32>
    %cst_36 = arith.constant dense<0.000000e+00> : vector<64xf32>
    %102 = vector.multi_reduction <add>, %101, %cst_36 [0] : vector<8x64xf32> to vector<64xf32>
    %103 = vector.shape_cast %102 : vector<64xf32> to vector<1x64xf32>
    %104 = arith.mulf %101, %101 : vector<8x64xf32>
    %cst_37 = arith.constant dense<0.000000e+00> : vector<64xf32>
    %105 = vector.multi_reduction <add>, %104, %cst_37 [0] : vector<8x64xf32> to vector<64xf32>
    %106 = vector.shape_cast %105 : vector<64xf32> to vector<1x64xf32>
    %cst_38 = arith.constant 1.250000e-01 : f32
    %107 = vector.broadcast %cst_38 : f32 to vector<1x64xf32>
    %108 = arith.mulf %103, %107 : vector<1x64xf32>
    %cst_39 = arith.constant 1.250000e-01 : f32
    %109 = vector.broadcast %cst_39 : f32 to vector<1x64xf32>
    %110 = arith.mulf %106, %109 : vector<1x64xf32>
    %111 = arith.mulf %108, %108 : vector<1x64xf32>
    %112 = arith.subf %110, %111 : vector<1x64xf32>
    %113 = vector.broadcast %108 : vector<1x64xf32> to vector<8x64xf32>
    %114 = arith.subf %101, %113 : vector<8x64xf32>
    %cst_40 = arith.constant 9.99999974E-6 : f32
    %115 = vector.broadcast %cst_40 : f32 to vector<1x64xf32>
    %116 = arith.addf %112, %115 : vector<1x64xf32>
    %117 = math.rsqrt %116 : vector<1x64xf32>
    %118 = vector.broadcast %117 : vector<1x64xf32> to vector<8x64xf32>
    %119 = arith.mulf %114, %118 : vector<8x64xf32>
    %cst_41 = arith.constant 0.000000e+00 : f32
    %120 = vector.broadcast %cst_41 : f32 to vector<8x64xf32>
    %121 = arith.maximumf %119, %120 : vector<8x64xf32>
    %122 = arith.truncf %121 : vector<8x64xf32> to vector<8x64xbf16>
    %cst_42 = arith.constant dense<0.000000e+00> : vector<8x64xf32>
    %123 = tpu.matmul %122, %1, %cst_42 {dimension_numbers = #tpu.dot_dimension_numbers<[1], [0], [0], [1], [0, 0, 1, 1], [], []>} : vector<8x64xbf16>, vector<64x64xbf16>, vector<8x64xf32> -> vector<8x64xf32>
    %cst_43 = arith.constant dense<0.000000e+00> : vector<64xf32>
    %124 = vector.multi_reduction <add>, %123, %cst_43 [0] : vector<8x64xf32> to vector<64xf32>
    %125 = vector.shape_cast %124 : vector<64xf32> to vector<1x64xf32>
    %126 = arith.mulf %123, %123 : vector<8x64xf32>
    %cst_44 = arith.constant dense<0.000000e+00> : vector<64xf32>
    %127 = vector.multi_reduction <add>, %126, %cst_44 [0] : vector<8x64xf32> to vector<64xf32>
    %128 = vector.shape_cast %127 : vector<64xf32> to vector<1x64xf32>
    %cst_45 = arith.constant 1.250000e-01 : f32
    %129 = vector.broadcast %cst_45 : f32 to vector<1x64xf32>
    %130 = arith.mulf %125, %129 : vector<1x64xf32>
    %cst_46 = arith.constant 1.250000e-01 : f32
    %131 = vector.broadcast %cst_46 : f32 to vector<1x64xf32>
    %132 = arith.mulf %128, %131 : vector<1x64xf32>
    %133 = arith.mulf %130, %130 : vector<1x64xf32>
    %134 = arith.subf %132, %133 : vector<1x64xf32>
    %135 = vector.broadcast %130 : vector<1x64xf32> to vector<8x64xf32>
    %136 = arith.subf %123, %135 : vector<8x64xf32>
    %cst_47 = arith.constant 9.99999974E-6 : f32
    %137 = vector.broadcast %cst_47 : f32 to vector<1x64xf32>
    %138 = arith.addf %134, %137 : vector<1x64xf32>
    %139 = math.rsqrt %138 : vector<1x64xf32>
    %140 = vector.broadcast %139 : vector<1x64xf32> to vector<8x64xf32>
    %141 = arith.mulf %136, %140 : vector<8x64xf32>
    %cst_48 = arith.constant 0.000000e+00 : f32
    %142 = vector.broadcast %cst_48 : f32 to vector<8x64xf32>
    %143 = arith.maximumf %141, %142 : vector<8x64xf32>
    %144 = arith.truncf %143 : vector<8x64xf32> to vector<8x64xbf16>
    %cst_49 = arith.constant dense<0.000000e+00> : vector<8x64xf32>
    %145 = tpu.matmul %144, %2, %cst_49 {dimension_numbers = #tpu.dot_dimension_numbers<[1], [0], [0], [1], [0, 0, 1, 1], [], []>} : vector<8x64xbf16>, vector<64x64xbf16>, vector<8x64xf32> -> vector<8x64xf32>
    %cst_50 = arith.constant dense<0.000000e+00> : vector<64xf32>
    %146 = vector.multi_reduction <add>, %145, %cst_50 [0] : vector<8x64xf32> to vector<64xf32>
    %147 = vector.shape_cast %146 : vector<64xf32> to vector<1x64xf32>
    %148 = arith.mulf %145, %145 : vector<8x64xf32>
    %cst_51 = arith.constant dense<0.000000e+00> : vector<64xf32>
    %149 = vector.multi_reduction <add>, %148, %cst_51 [0] : vector<8x64xf32> to vector<64xf32>
    %150 = vector.shape_cast %149 : vector<64xf32> to vector<1x64xf32>
    %cst_52 = arith.constant 1.250000e-01 : f32
    %151 = vector.broadcast %cst_52 : f32 to vector<1x64xf32>
    %152 = arith.mulf %147, %151 : vector<1x64xf32>
    %cst_53 = arith.constant 1.250000e-01 : f32
    %153 = vector.broadcast %cst_53 : f32 to vector<1x64xf32>
    %154 = arith.mulf %150, %153 : vector<1x64xf32>
    %155 = arith.mulf %152, %152 : vector<1x64xf32>
    %156 = arith.subf %154, %155 : vector<1x64xf32>
    %157 = vector.broadcast %152 : vector<1x64xf32> to vector<8x64xf32>
    %158 = arith.subf %145, %157 : vector<8x64xf32>
    %cst_54 = arith.constant 9.99999974E-6 : f32
    %159 = vector.broadcast %cst_54 : f32 to vector<1x64xf32>
    %160 = arith.addf %156, %159 : vector<1x64xf32>
    %161 = math.rsqrt %160 : vector<1x64xf32>
    %162 = vector.broadcast %161 : vector<1x64xf32> to vector<8x64xf32>
    %163 = arith.mulf %158, %162 : vector<8x64xf32>
    %164 = arith.truncf %163 : vector<8x64xf32> to vector<8x64xbf16>
    %cst_55 = arith.constant dense<0.000000e+00> : vector<8x16xf32>
    %165 = tpu.matmul %164, %3, %cst_55 {dimension_numbers = #tpu.dot_dimension_numbers<[1], [0], [0], [1], [0, 0, 1, 1], [], []>} : vector<8x64xbf16>, vector<64x16xbf16>, vector<8x16xf32> -> vector<8x16xf32>
    %cst_56 = arith.constant dense<0.000000e+00> : vector<16xf32>
    %166 = vector.multi_reduction <add>, %165, %cst_56 [0] : vector<8x16xf32> to vector<16xf32>
    %167 = vector.shape_cast %166 : vector<16xf32> to vector<1x16xf32>
    %168 = arith.mulf %165, %165 : vector<8x16xf32>
    %cst_57 = arith.constant dense<0.000000e+00> : vector<16xf32>
    %169 = vector.multi_reduction <add>, %168, %cst_57 [0] : vector<8x16xf32> to vector<16xf32>
    %170 = vector.shape_cast %169 : vector<16xf32> to vector<1x16xf32>
    %cst_58 = arith.constant 1.250000e-01 : f32
    %171 = vector.broadcast %cst_58 : f32 to vector<1x16xf32>
    %172 = arith.mulf %167, %171 : vector<1x16xf32>
    %cst_59 = arith.constant 1.250000e-01 : f32
    %173 = vector.broadcast %cst_59 : f32 to vector<1x16xf32>
    %174 = arith.mulf %170, %173 : vector<1x16xf32>
    %175 = arith.mulf %172, %172 : vector<1x16xf32>
    %176 = arith.subf %174, %175 : vector<1x16xf32>
    %177 = vector.broadcast %172 : vector<1x16xf32> to vector<8x16xf32>
    %178 = arith.subf %165, %177 : vector<8x16xf32>
    %cst_60 = arith.constant 9.99999974E-6 : f32
    %179 = vector.broadcast %cst_60 : f32 to vector<1x16xf32>
    %180 = arith.addf %176, %179 : vector<1x16xf32>
    %181 = math.rsqrt %180 : vector<1x16xf32>
    %182 = vector.broadcast %181 : vector<1x16xf32> to vector<8x16xf32>
    %183 = arith.mulf %178, %182 : vector<8x16xf32>
    %cst_61 = arith.constant 0.000000e+00 : f32
    %184 = vector.broadcast %cst_61 : f32 to vector<8x16xf32>
    %185 = arith.maximumf %183, %184 : vector<8x16xf32>
    %186 = arith.truncf %185 : vector<8x16xf32> to vector<8x16xbf16>
    %cst_62 = arith.constant dense<0.000000e+00> : vector<8x64xf32>
    %187 = tpu.matmul %186, %4, %cst_62 {dimension_numbers = #tpu.dot_dimension_numbers<[1], [0], [0], [1], [0, 0, 1, 1], [], []>} : vector<8x16xbf16>, vector<16x64xbf16>, vector<8x64xf32> -> vector<8x64xf32>
    %188 = vector.broadcast %6 : vector<1x64xf32> to vector<8x64xf32>
    %189 = arith.addf %187, %188 : vector<8x64xf32>
    %190 = arith.mulf %98, %163 : vector<8x64xf32>
    %cst_63 = arith.constant dense<0.000000e+00> : vector<8xf32>
    %191 = vector.multi_reduction <add>, %190, %cst_63 [1] : vector<8x64xf32> to vector<8xf32>
    %192 = vector.shape_cast %191 : vector<8xf32> to vector<8x1xf32>
    %193 = arith.mulf %98, %98 : vector<8x64xf32>
    %cst_64 = arith.constant dense<0.000000e+00> : vector<8xf32>
    %194 = vector.multi_reduction <add>, %193, %cst_64 [1] : vector<8x64xf32> to vector<8xf32>
    %195 = vector.shape_cast %194 : vector<8xf32> to vector<8x1xf32>
    %196 = arith.mulf %163, %163 : vector<8x64xf32>
    %cst_65 = arith.constant dense<0.000000e+00> : vector<8xf32>
    %197 = vector.multi_reduction <add>, %196, %cst_65 [1] : vector<8x64xf32> to vector<8xf32>
    %198 = vector.shape_cast %197 : vector<8xf32> to vector<8x1xf32>
    %199 = arith.mulf %195, %198 : vector<8x1xf32>
    %cst_66 = arith.constant 1.000000e-16 : f32
    %200 = vector.broadcast %cst_66 : f32 to vector<8x1xf32>
    %201 = arith.maximumf %199, %200 : vector<8x1xf32>
    %202 = math.rsqrt %201 : vector<8x1xf32>
    %203 = arith.mulf %192, %202 : vector<8x1xf32>
    %cst_67 = arith.constant dense<0.000000e+00> : vector<1xf32>
    %204 = vector.multi_reduction <add>, %203, %cst_67 [0] : vector<8x1xf32> to vector<1xf32>
    %205 = vector.shape_cast %204 : vector<1xf32> to vector<1x1xf32>
    %206 = arith.mulf %189, %72 : vector<8x64xf32>
    %cst_68 = arith.constant dense<0.000000e+00> : vector<8xf32>
    %207 = vector.multi_reduction <add>, %206, %cst_68 [1] : vector<8x64xf32> to vector<8xf32>
    %208 = vector.shape_cast %207 : vector<8xf32> to vector<8x1xf32>
    %209 = arith.mulf %189, %189 : vector<8x64xf32>
    %cst_69 = arith.constant dense<0.000000e+00> : vector<8xf32>
    %210 = vector.multi_reduction <add>, %209, %cst_69 [1] : vector<8x64xf32> to vector<8xf32>
    %211 = vector.shape_cast %210 : vector<8xf32> to vector<8x1xf32>
    %212 = arith.mulf %72, %72 : vector<8x64xf32>
    %cst_70 = arith.constant dense<0.000000e+00> : vector<8xf32>
    %213 = vector.multi_reduction <add>, %212, %cst_70 [1] : vector<8x64xf32> to vector<8xf32>
    %214 = vector.shape_cast %213 : vector<8xf32> to vector<8x1xf32>
    %215 = arith.mulf %211, %214 : vector<8x1xf32>
    %cst_71 = arith.constant 1.000000e-16 : f32
    %216 = vector.broadcast %cst_71 : f32 to vector<8x1xf32>
    %217 = arith.maximumf %215, %216 : vector<8x1xf32>
    %218 = math.rsqrt %217 : vector<8x1xf32>
    %219 = arith.mulf %208, %218 : vector<8x1xf32>
    %cst_72 = arith.constant dense<0.000000e+00> : vector<1xf32>
    %220 = vector.multi_reduction <add>, %219, %cst_72 [0] : vector<8x1xf32> to vector<1xf32>
    %221 = vector.shape_cast %220 : vector<1xf32> to vector<1x1xf32>
    %222 = arith.addf %205, %221 : vector<1x1xf32>
    %cst_73 = arith.constant -6.250000e-02 : f32
    %223 = vector.broadcast %cst_73 : f32 to vector<1x1xf32>
    %224 = arith.mulf %222, %223 : vector<1x1xf32>
    %c0_74 = arith.constant 0 : index
    %c0_75 = arith.constant 0 : index
    %225 = vector.load %arg2[%c0_74, %c0_75] : memref<1x1xf32, #tpu.memory_space<vmem>>, vector<1x1xf32>
    tpu.vector_store %arg2[%c0_74, %c0_75], %224 {strides = array<i32>} : memref<1x1xf32, #tpu.memory_space<vmem>>, vector<1x1xf32>,
    return
  }
}

</mosaic_0001>

<bundles_post_ra>
// kernel: con_loss_simsam.1
= control target key start
LH: loop header
LB: loop body
LE: loop exit
PB: predicated region body
PF: predicated region fallthrough
CT: control target
= control target key end

     0   :  { %v1063_v1 = vmov 0.0   ;;  %vm1064_vm0 = vmmov 0   ;;  %vm60_vm1 = vcmask 261120   ;;  %s1305_s0 = inlined_call_operand.vmem [shape: f32[16,32], index: 0, kind: input, shape index: {}]   ;;  %s1306_s1 = inlined_call_operand.vmem [shape: bf16[256,64], index: 1, kind: input, shape index: {}]   ;;  %s1307_s2 = inlined_call_operand.hbm [shape: f32[1,1], index: 2, kind: output, shape index: {}]  }
   0x1   :  { %v1084_v0 = vld [vmem:[%s1306_s1] sm:$0xff]   ;;  %901 = vmatprep.subr.bf16.mxu0 %v1063_v1  ;;  %v1090_v2 = vld [vmem:[%s1306_s1 + $0x8] sm:$0xff]   ;;  %909 = vmatprep.subr.bf16.mxu1 %v1063_v1 }
   0x2   :  { %902 = vmatpush3.bf16.msra.mxu0 %v1084_v0  ;;  %905 = vmatprep.mubr.msk.bf16.mxu0 %vm1064_vm0, %v1063_v1  ;;  %v45_v3 = vld [vmem:[%s1305_s0] sm:$0xff] }
   0x3   :  { %903 = vmatprep.subr.bf16.mxu0 %v1063_v1  ;;  %917 = vmatprep.mubr.msk.bf16.mxu1 %vm1064_vm0, %v1063_v1  ;;  %v47_v4 = vpack.c.bf16 %v45_v3, %v45_v3 }
   0x6   :  { %904 = vmatpush3.bf16.msra.mxu0 %v1090_v2 }
   0x7   :  { %921 = vmatprep.subr.bf16.mxu0 %v1063_v1 }
   0x9   :  { %906 = vmatmul.mubr.msk.bf16.vlgmr.msra.gmra.mrb[0].mxu0 %vm60_vm1, %v47_v4 }
   0xa   :  { %929 = vmatprep.mubr.msk.bf16.mxu0 %vm1064_vm0, %v1063_v1 }
   0xb   :  { %7 = vsyncpa [#allocation3], 0  ;;  %v1110_v5 = vld [vmem:[%s1306_s1 + $0x10] sm:$0xff]   ;;  %v1117_v6 = vld [vmem:[%s1306_s1 + $0x18] sm:$0xff]   ;;  %vm104_vm2 = vcmask 523264   ;;  %vm380_vm3 = vcmask 130048  }
   0xc   :  { %910 = vmatpush3.bf16.msra.mxu1 %v1110_v5  ;;  %v1124_v7 = vld [vmem:[%s1306_s1 + $0x20] sm:$0xff]   ;;  %v1131_v8 = vld [vmem:[%s1306_s1 + $0x28] sm:$0xff]   ;;  %v1143_v38 = vld [vmem:[%s1306_s1 + $0x30] sm:$0xff]   ;;  %vm820_vm4 = vcmask 0  }
   0xd   :  { %911 = vmatprep.subr.bf16.mxu1 %v1063_v1  ;;  %922 = vmatpush3.bf16.msra.mxu0 %v1143_v38  ;;  %v1150_v39 = vld [vmem:[%s1306_s1 + $0x38] sm:$0xff]   ;;  %v1157_v40 = vld [vmem:[%s1306_s1 + $0x40] sm:$0xff]   ;;  %v1164_v41 = vld [vmem:[%s1306_s1 + $0x48] sm:$0xff]  }
   0xe   :  { %923 = vmatprep.subr.bf16.mxu0 %v1063_v1 }
  0x10   :  { %912 = vmatpush3.bf16.msra.mxu1 %v1117_v6 }
  0x11   :  { %913 = vmatprep.subr.bf16.mxu1 %v1063_v1  ;;  %924 = vmatpush3.bf16.msra.mxu0 %v1150_v39 }
  0x12   :  { %925 = vmatprep.subr.bf16.mxu0 %v1063_v1 }
  0x14   :  { %914 = vmatpush3.bf16.msra.mxu1 %v1124_v7 }
  0x15   :  { %915 = vmatprep.subr.bf16.mxu1 %v1063_v1  ;;  %926 = vmatpush3.bf16.msra.mxu0 %v1157_v40 }
  0x16   :  { %927 = vmatprep.subr.bf16.mxu0 %v1063_v1 }
  0x18   :  { %916 = vmatpush3.bf16.msra.mxu1 %v1131_v8 }
  0x19   :  { %933 = vmatprep.subr.bf16.mxu1 %v1063_v1  ;;  %928 = vmatpush3.bf16.msra.mxu0 %v1164_v41 }
  0x1a   :  { %945 = vmatprep.subr.bf16.mxu0 %v1063_v1 }
  0xdc   :  { %v98_v9 = vpop.f32.mrb[0].mxu0 }
  0xdd   :  { %v105_v10 = vsel %vm104_vm2, %v98_v9, 0.0  ;;  %v112_v11 = vmul.f32 %v98_v9, %v98_v9  ;;  %v907_v12 = vpop.f32.mrb[1].mxu0 }
  0xde   :  { %v106_v13 = vrot.slane %v105_v10, 4  ;;  %v101_v14 = vpop.f32.mrb[2].mxu0 }
  0xdf   :  { %v113_v15 = vsel %vm104_vm2, %v112_v11, 0.0  ;;  %v908_v16 = vpop.f32.mrb[3].mxu0  ;;  %v1176_v14 = vld [vmem:[%s1306_s1 + $0x50] sm:$0xff]  }
  0xe0   :  { %v107_v17 = vadd.f32 %v106_v13, %v105_v10  ;;  %v114_v18 = vrot.slane %v113_v15, 4  ;;  %v1190_v16 = vld [vmem:[%s1306_s1 + $0x60] sm:$0xff]  }
  0xe2   :  { %v108_v19 = vrot.slane %v107_v17, 2  ;;  %v115_v20 = vadd.f32 %v114_v18, %v113_v15  ;;  %v1183_v15 = vld [vmem:[%s1306_s1 + $0x58] sm:$0xff]  }
  0xe4   :  { %v109_v21 = vadd.f32 %v108_v19, %v107_v17  ;;  %v116_v22 = vrot.slane %v115_v20, 2  ;;  %v1197_v17 = vld [vmem:[%s1306_s1 + $0x68] sm:$0xff]  }
  0xe6   :  { %v110_v23 = vrot.slane %v109_v21, 1  ;;  %v117_v24 = vadd.f32 %v116_v22, %v115_v20 }
  0xe8   :  { %v111_v25 = vadd.f32 %v110_v23, %v109_v21  ;;  %v118_v26 = vrot.slane %v117_v24, 1 }
  0xea   :  { %v119_v27 = vadd.f32 %v118_v26, %v117_v24  ;;  %v120_v28 = vmul.f32 0.125, %v111_v25 }
  0xec   :  { %v121_v29 = vmul.f32 0.125, %v119_v27  ;;  %v122_v30 = vmul.f32 %v120_v28, %v120_v28  ;;  %v124_v33 = vsub.f32 %v98_v9, %v120_v28 }
  0xee   :  { %v123_v31 = vsub.f32 %v121_v29, %v122_v30 }
  0xf0   :  { %v125_v32 = vadd.f32 1e-05, %v123_v31 }
  0xf2   :  { %1019 = vrsqrt.f32 %v125_v32 }
  0xfc   :  { %v1020_v34 = vpop.eup %1019 }
  0xfd   :  { %v127_v35 = vmul.f32 %v1020_v34, %v124_v33 }
  0xff   :  { %v128_v36 = vmax.f32 %v127_v35, 0.0 }
 0x101   :  { %v129_v37 = vpack.c.bf16 %v128_v36, %v128_v36 }
 0x103   :  { %918 = vmatmul.mubr.msk.bf16.vlgmr.msra.gmra.mrb[0].mxu1 %vm104_vm2, %v129_v37 }
 0x104   :  { %941 = vmatprep.mubr.msk.bf16.mxu1 %vm1064_vm0, %v1063_v1  ;;  %934 = vmatpush3.bf16.msra.mxu1 %v1176_v14 }
 0x105   :  { %935 = vmatprep.subr.bf16.mxu1 %v1063_v1 }
 0x108   :  { %936 = vmatpush3.bf16.msra.mxu1 %v1183_v15 }
 0x109   :  { %937 = vmatprep.subr.bf16.mxu1 %v1063_v1 }
 0x10c   :  { %938 = vmatpush3.bf16.msra.mxu1 %v1190_v16 }
 0x10d   :  { %939 = vmatprep.subr.bf16.mxu1 %v1063_v1 }
 0x110   :  { %940 = vmatpush3.bf16.msra.mxu1 %v1197_v17 }
 0x111   :  { %959 = vmatprep.subr.bf16.mxu1 %v1063_v1 }
 0x1d6   :  { %v191_v42 = vpop.f32.mrb[0].mxu1 }
 0x1d7   :  { %v197_v43 = vsel %vm104_vm2, %v191_v42, 0.0  ;;  %v204_v44 = vmul.f32 %v191_v42, %v191_v42  ;;  %v919_v45 = vpop.f32.mrb[1].mxu1 }
 0x1d8   :  { %v198_v46 = vrot.slane %v197_v43, 4  ;;  %v194_v47 = vpop.f32.mrb[2].mxu1 }
 0x1d9   :  { %v205_v48 = vsel %vm104_vm2, %v204_v44, 0.0  ;;  %v920_v49 = vpop.f32.mrb[3].mxu1 }
 0x1da   :  { %v199_v50 = vadd.f32 %v198_v46, %v197_v43  ;;  %v206_v51 = vrot.slane %v205_v48, 4 }
 0x1dc   :  { %v200_v52 = vrot.slane %v199_v50, 2  ;;  %v207_v53 = vadd.f32 %v206_v51, %v205_v48 }
 0x1de   :  { %v201_v54 = vadd.f32 %v200_v52, %v199_v50  ;;  %v208_v55 = vrot.slane %v207_v53, 2 }
 0x1e0   :  { %v202_v56 = vrot.slane %v201_v54, 1  ;;  %v209_v57 = vadd.f32 %v208_v55, %v207_v53 }
 0x1e2   :  { %v203_v58 = vadd.f32 %v202_v56, %v201_v54  ;;  %v210_v59 = vrot.slane %v209_v57, 1 }
 0x1e4   :  { %v211_v60 = vadd.f32 %v210_v59, %v209_v57  ;;  %v212_v61 = vmul.f32 0.125, %v203_v58 }
 0x1e6   :  { %v213_v62 = vmul.f32 0.125, %v211_v60  ;;  %v214_v63 = vmul.f32 %v212_v61, %v212_v61  ;;  %v216_v9 = vsub.f32 %v191_v42, %v212_v61 }
 0x1e8   :  { %v215_v3 = vsub.f32 %v213_v62, %v214_v63 }
 0x1ea   :  { %v217_v4 = vadd.f32 1e-05, %v215_v3 }
 0x1ec   :  { %1021 = vrsqrt.f32 %v217_v4 }
 0x1f6   :  { %v1022_v10 = vpop.eup %1021 }
 0x1f7   :  { %v219_v11 = vmul.f32 %v1022_v10, %v216_v9 }
 0x1f9   :  { %v220_v12 = vmax.f32 %v219_v11, 0.0 }
 0x1fb   :  { %v221_v13 = vpack.c.bf16 %v220_v12, %v220_v12 }
 0x1fd   :  { %930 = vmatmul.mubr.msk.bf16.vlgmr.msra.gmra.mrb[4].mxu0 %vm104_vm2, %v221_v13 }
 0x1fe   :  { %947 = vmatprep.mubr.msk.bf16.mxu0 %vm1064_vm0, %v1063_v1 }
 0x2d0   :  { %v283_v18 = vpop.f32.mrb[4].mxu0 }
 0x2d1   :  { %v289_v19 = vsel %vm104_vm2, %v283_v18, 0.0  ;;  %v296_v20 = vmul.f32 %v283_v18, %v283_v18  ;;  %v931_v21 = vpop.f32.mrb[5].mxu0 }
 0x2d2   :  { %v290_v22 = vrot.slane %v289_v19, 4  ;;  %v286_v23 = vpop.f32.mrb[6].mxu0 }
 0x2d3   :  { %v297_v24 = vsel %vm104_vm2, %v296_v20, 0.0  ;;  %v932_v25 = vpop.f32.mrb[7].mxu0  ;;  %v46_v23 = vld [vmem:[%s1305_s0 + $0x8] sm:$0xff] }
 0x2d4   :  { %v291_v26 = vadd.f32 %v290_v22, %v289_v19  ;;  %v298_v27 = vrot.slane %v297_v24, 4 }
 0x2d6   :  { %v292_v28 = vrot.slane %v291_v26, 2  ;;  %v299_v29 = vadd.f32 %v298_v27, %v297_v24  ;;  %v459_v24 = vpack.c.bf16 %v46_v23, %v46_v23 }
 0x2d8   :  { %v293_v30 = vadd.f32 %v292_v28, %v291_v26  ;;  %v300_v31 = vrot.slane %v299_v29, 2 }
 0x2da   :  { %v294_v32 = vrot.slane %v293_v30, 1  ;;  %v301_v33 = vadd.f32 %v300_v31, %v299_v29 }
 0x2dc   :  { %v295_v34 = vadd.f32 %v294_v32, %v293_v30  ;;  %v302_v35 = vrot.slane %v301_v33, 1 }
 0x2de   :  { %v303_v36 = vadd.f32 %v302_v35, %v301_v33  ;;  %v304_v37 = vmul.f32 0.125, %v295_v34 }
 0x2e0   :  { %v305_v42 = vmul.f32 0.125, %v303_v36  ;;  %v306_v43 = vmul.f32 %v304_v37, %v304_v37  ;;  %v308_v46 = vsub.f32 %v283_v18, %v304_v37 }
 0x2e2   :  { %v307_v44 = vsub.f32 %v305_v42, %v306_v43 }
 0x2e4   :  { %v309_v45 = vadd.f32 1e-05, %v307_v44 }
 0x2e6   :  { %1023 = vrsqrt.f32 %v309_v45 }
 0x2f0   :  { %v1024_v47 = vpop.eup %1023 }
 0x2f1   :  { %v1203_v48 = vmul.f32 %v1024_v47, %v308_v46 }
 0x2f3   :  { %v312_v49 = vpack.c.bf16 %v1203_v48, %v1203_v48 }
 0x2f5   :  { %942 = vmatmul.mubr.msk.bf16.vlgmr.msra.gmra.mrb[4].mxu1 %vm104_vm2, %v312_v49 }
 0x2f6   :  { %960 = vmatpush3.bf16.msra.mxu1 %v1110_v5  ;;  %967 = vmatprep.mubr.msk.bf16.mxu1 %vm1064_vm0, %v1063_v1  ;;  %v1221_v5 = vld [vmem:[%s1306_s1 + $0x70] sm:$0xff]  }
 0x2f7   :  { %961 = vmatprep.subr.bf16.mxu1 %v1063_v1  ;;  %946 = vmatpush3.bf16.msra.mxu0 %v1221_v5 }
 0x2f8   :  { %951 = vmatprep.subr.bf16.mxu0 %v1063_v1 }
 0x2fa   :  { %962 = vmatpush3.bf16.msra.mxu1 %v1117_v6 }
 0x2fb   :  { %963 = vmatprep.subr.bf16.mxu1 %v1063_v1 }
 0x2fe   :  { %964 = vmatpush3.bf16.msra.mxu1 %v1124_v7 }
 0x2ff   :  { %965 = vmatprep.subr.bf16.mxu1 %v1063_v1 }
 0x302   :  { %966 = vmatpush3.bf16.msra.mxu1 %v1131_v8 }
 0x303   :  { %983 = vmatprep.subr.bf16.mxu1 %v1063_v1 }
 0x3c8   :  { %v374_v6 = vpop.f32.mrb[4].mxu1 }
 0x3c9   :  { %v381_v50 = vsel %vm380_vm3, %v374_v6, 0.0  ;;  %v388_v7 = vmul.f32 %v374_v6, %v374_v6  ;;  %v943_v51 = vpop.f32.mrb[5].mxu1 }
 0x3ca   :  { %v382_v52 = vrot.slane %v381_v50, 4  ;;  %v377_v53 = vpop.f32.mrb[6].mxu1 }
 0x3cb   :  { %v389_v8 = vsel %vm380_vm3, %v388_v7, 0.0  ;;  %v944_v54 = vpop.f32.mrb[7].mxu1 }
 0x3cc   :  { %v383_v55 = vadd.f32 %v382_v52, %v381_v50  ;;  %v390_v56 = vrot.slane %v389_v8, 4 }
 0x3ce   :  { %v384_v57 = vrot.slane %v383_v55, 2  ;;  %v391_v58 = vadd.f32 %v390_v56, %v389_v8 }
 0x3d0   :  { %v385_v59 = vadd.f32 %v384_v57, %v383_v55  ;;  %v392_v60 = vrot.slane %v391_v58, 2 }
 0x3d2   :  { %v386_v61 = vrot.slane %v385_v59, 1  ;;  %v393_v62 = vadd.f32 %v392_v60, %v391_v58 }
 0x3d4   :  { %v387_v63 = vadd.f32 %v386_v61, %v385_v59  ;;  %v394_v3 = vrot.slane %v393_v62, 1 }
 0x3d6   :  { %v395_v4 = vadd.f32 %v394_v3, %v393_v62  ;;  %v396_v9 = vmul.f32 0.125, %v387_v63 }
 0x3d8   :  { %v397_v10 = vmul.f32 0.125, %v395_v4  ;;  %v398_v11 = vmul.f32 %v396_v9, %v396_v9  ;;  %v400_v18 = vsub.f32 %v374_v6, %v396_v9 }
 0x3da   :  { %v399_v12 = vsub.f32 %v397_v10, %v398_v11 }
 0x3dc   :  { %v401_v13 = vadd.f32 1e-05, %v399_v12 }
 0x3de   :  { %1025 = vrsqrt.f32 %v401_v13 }
 0x3e8   :  { %v1026_v19 = vpop.eup %1025 }
 0x3e9   :  { %v403_v20 = vmul.f32 %v1026_v19, %v400_v18 }
 0x3eb   :  { %v404_v21 = vmax.f32 %v403_v20, 0.0 }
 0x3ed   :  { %v405_v22 = vpack.c.bf16 %v404_v21, %v404_v21 }
 0x3ef   :  { %948 = vmatmul.mubr.msk.bf16.vlgmr.msra.gmra.mrb[8].mxu0 %vm380_vm3, %v405_v22 }
 0x3f0   :  { %952 = vmatpush3.bf16.msra.mxu0 %v1084_v0  ;;  %955 = vmatprep.mubr.msk.bf16.mxu0 %vm1064_vm0, %v1063_v1  ;;  %v406_v0 = vlaneseq }
 0x3f1   :  { %953 = vmatprep.subr.bf16.mxu0 %v1063_v1 }
 0x3f4   :  { %954 = vmatpush3.bf16.msra.mxu0 %v1090_v2  ;;  %v407_v2 = vshrl.u32 %v406_v0, 7 }
 0x3f5   :  { %971 = vmatprep.subr.bf16.mxu0 %v1063_v1 }
 0x3f6   :  { %v408_v26 = vsub.s32 0, %v407_v2 }
 0x3f7   :  { %956 = vmatmul.mubr.msk.bf16.vlgmr.msra.gmra.mrb[12].mxu0 %vm60_vm1, %v459_v24 }
 0x3f8   :  { %972 = vmatpush3.bf16.msra.mxu0 %v1143_v38  ;;  %979 = vmatprep.mubr.msk.bf16.mxu0 %vm1064_vm0, %v1063_v1  ;;  %v43_v38 = vld [vmem:[%s1306_s1 + $0x78] sm:$0x1]  ;;  %s1065_s1 = smov [#allocation2]  }
 0x3f9   :  { %973 = vmatprep.subr.bf16.mxu0 %v1063_v1  ;;  %v44_v25 = vunpack.c.l.bf16 %v43_v38  ;;  %s828_s16 = sshll.u32 %s1065_s1, 4  ;;  %s829_s16 = int_to_ptr.vmem [resolvable:$true] %s828_s16 }
 0x3fa   :  { %s1039_s17 = scalar_lea.vmem %s829_s16, 16  ;;  %s1043_s18 = scalar_lea.vmem %s829_s16, 32 }
 0x3fb   :  { %v1251_v27 = vrot.slane %v44_v25, %v408_v26  ;;  %p1040_p0 = scmp.ne.s32.totalorder %s829_s16, %s1039_s17  ;;  %p1044_p1 = scmp.lt.s32.totalorder %s829_s16, %s829_s16 }
 0x3fc   :  { %974 = vmatpush3.bf16.msra.mxu0 %v1150_v39  ;;  %p1045_p2 = scmp.lt.s32.totalorder %s1043_s18, %s1039_s17 }
 0x3fd   :  { %975 = vmatprep.subr.bf16.mxu0 %v1063_v1 }
 0x3fe   :  { %p1046_p3 = por %p1045_p2, %p1044_p1 }
 0x400   :  { %976 = vmatpush3.bf16.msra.mxu0 %v1157_v40  ;;  %p1047_p4 = pnand %p1046_p3, %p1040_p0 }
 0x401   :  { %977 = vmatprep.subr.bf16.mxu0 %v1063_v1 }
 0x404   :  { %978 = vmatpush3.bf16.msra.mxu0 %v1164_v41 }
 0x405   :  { %995 = vmatprep.subr.bf16.mxu0 %v1063_v1 }
 0x4c2   :  { %v453_v39 = vpop.f32.mrb[8].mxu0 }
 0x4c3   :  { %v1254_v28 = vadd.f32 %v453_v39, %v1251_v27  ;;  %v949_v40 = vpop.f32.mrb[9].mxu0 }
 0x4c4   :  { %v456_v29 = vpop.f32.mrb[10].mxu0 }
 0x4c5   :  { %v950_v30 = vpop.f32.mrb[11].mxu0  ;;  %v778_v41 = vmul.f32 %v1254_v28, %v1254_v28 }
 0x4c7   :  { %v779_v31 = vsel %vm104_vm2, %v778_v41, 0.0 }
 0x4c8   :  { %780 = vadd.xlane.f32.xlu0 %v779_v31 }
 0x4ca   :  { %v497_v32 = vpop.f32.mrb[12].mxu0 }
 0x4cb   :  { %v503_v33 = vsel %vm104_vm2, %v497_v32, 0.0  ;;  %v510_v34 = vmul.f32 %v497_v32, %v497_v32  ;;  %v957_v35 = vpop.f32.mrb[13].mxu0 }
 0x4cc   :  { %v504_v36 = vrot.slane %v503_v33, 4  ;;  %v500_v37 = vpop.f32.mrb[14].mxu0 }
 0x4cd   :  { %v511_v42 = vsel %vm104_vm2, %v510_v34, 0.0  ;;  %v958_v43 = vpop.f32.mrb[15].mxu0 }
 0x4ce   :  { %v505_v44 = vadd.f32 %v504_v36, %v503_v33  ;;  %v512_v45 = vrot.slane %v511_v42, 4 }
 0x4d0   :  { %v506_v46 = vrot.slane %v505_v44, 2  ;;  %v513_v47 = vadd.f32 %v512_v45, %v511_v42 }
 0x4d2   :  { %v507_v49 = vadd.f32 %v506_v46, %v505_v44  ;;  %v514_v6 = vrot.slane %v513_v47, 2 }
 0x4d4   :  { %v508_v50 = vrot.slane %v507_v49, 1  ;;  %v515_v7 = vadd.f32 %v514_v6, %v513_v47 }
 0x4d6   :  { %v509_v51 = vadd.f32 %v508_v50, %v507_v49  ;;  %v516_v52 = vrot.slane %v515_v7, 1 }
 0x4d8   :  { %v517_v53 = vadd.f32 %v516_v52, %v515_v7  ;;  %v518_v8 = vmul.f32 0.125, %v509_v51 }
 0x4da   :  { %v519_v54 = vmul.f32 0.125, %v517_v53  ;;  %v520_v55 = vmul.f32 %v518_v8, %v518_v8  ;;  %v522_v58 = vsub.f32 %v497_v32, %v518_v8 }
 0x4dc   :  { %v521_v56 = vsub.f32 %v519_v54, %v520_v55 }
 0x4de   :  { %v523_v57 = vadd.f32 1e-05, %v521_v56 }
 0x4e0   :  { %1027 = vrsqrt.f32 %v523_v57 }
 0x4ea   :  { %v1028_v59 = vpop.eup %1027 }
 0x4eb   :  { %v525_v60 = vmul.f32 %v1028_v59, %v522_v58 }
 0x4ed   :  { %v526_v61 = vmax.f32 %v525_v60, 0.0 }
 0x4ef   :  { %v527_v62 = vpack.c.bf16 %v526_v61, %v526_v61 }
 0x4f1   :  { %968 = vmatmul.mubr.msk.bf16.vlgmr.msra.gmra.mrb[8].mxu1 %vm104_vm2, %v527_v62 }
 0x4f2   :  { %984 = vmatpush3.bf16.msra.mxu1 %v1176_v14  ;;  %991 = vmatprep.mubr.msk.bf16.mxu1 %vm1064_vm0, %v1063_v1 }
 0x4f3   :  { %985 = vmatprep.subr.bf16.mxu1 %v1063_v1 }
 0x4f6   :  { %986 = vmatpush3.bf16.msra.mxu1 %v1183_v15 }
 0x4f7   :  { %987 = vmatprep.subr.bf16.mxu1 %v1063_v1 }
 0x4fa   :  { %988 = vmatpush3.bf16.msra.mxu1 %v1190_v16 }
 0x4fb   :  { %989 = vmatprep.subr.bf16.mxu1 %v1063_v1 }
 0x4fe   :  { %990 = vmatpush3.bf16.msra.mxu1 %v1197_v17 }
 0x5c4   :  { %v565_v63 = vpop.f32.mrb[8].mxu1 }
 0x5c5   :  { %v571_v3 = vsel %vm104_vm2, %v565_v63, 0.0  ;;  %v578_v4 = vmul.f32 %v565_v63, %v565_v63  ;;  %v969_v14 = vpop.f32.mrb[9].mxu1 }
 0x5c6   :  { %v572_v9 = vrot.slane %v571_v3, 4  ;;  %v568_v10 = vpop.f32.mrb[10].mxu1 }
 0x5c7   :  { %v579_v11 = vsel %vm104_vm2, %v578_v4, 0.0  ;;  %v970_v12 = vpop.f32.mrb[11].mxu1 }
 0x5c8   :  { %v573_v13 = vadd.f32 %v572_v9, %v571_v3  ;;  %v580_v15 = vrot.slane %v579_v11, 4 }
 0x5ca   :  { %v574_v18 = vrot.slane %v573_v13, 2  ;;  %v581_v19 = vadd.f32 %v580_v15, %v579_v11 }
 0x5cc   :  { %v575_v20 = vadd.f32 %v574_v18, %v573_v13  ;;  %v582_v16 = vrot.slane %v581_v19, 2 }
 0x5ce   :  { %v576_v21 = vrot.slane %v575_v20, 1  ;;  %v583_v22 = vadd.f32 %v582_v16, %v581_v19 }
 0x5d0   :  { %v577_v23 = vadd.f32 %v576_v21, %v575_v20  ;;  %v584_v17 = vrot.slane %v583_v22, 1 }
 0x5d2   :  { %v585_v24 = vadd.f32 %v584_v17, %v583_v22  ;;  %v586_v0 = vmul.f32 0.125, %v577_v23 }
 0x5d4   :  { %v587_v2 = vmul.f32 0.125, %v585_v24  ;;  %v588_v38 = vmul.f32 %v586_v0, %v586_v0  ;;  %v590_v39 = vsub.f32 %v565_v63, %v586_v0 }
 0x5d6   :  { %v589_v25 = vsub.f32 %v587_v2, %v588_v38 }
 0x5d8   :  { %v591_v26 = vadd.f32 1e-05, %v589_v25 }
 0x5da   :  { %1029 = vrsqrt.f32 %v591_v26 }
 0x5e4   :  { %v1030_v40 = vpop.eup %1029 }
 0x5e5   :  { %v593_v29 = vmul.f32 %v1030_v40, %v590_v39 }
 0x5e7   :  { %v594_v30 = vmax.f32 %v593_v29, 0.0 }
 0x5e9   :  { %v595_v41 = vpack.c.bf16 %v594_v30, %v594_v30 }
 0x5eb   :  { %980 = vmatmul.mubr.msk.bf16.vlgmr.msra.gmra.mrb[16].mxu0 %vm104_vm2, %v595_v41 }
 0x5ec   :  { %996 = vmatpush3.bf16.msra.mxu0 %v1221_v5  ;;  %997 = vmatprep.mubr.msk.bf16.mxu0 %vm1064_vm0, %v1063_v1 }
 0x6be   :  { %v633_v31 = vpop.f32.mrb[16].mxu0 }
 0x6bf   :  { %v639_v32 = vsel %vm104_vm2, %v633_v31, 0.0  ;;  %v646_v33 = vmul.f32 %v633_v31, %v633_v31  ;;  %v981_v34 = vpop.f32.mrb[17].mxu0 }
 0x6c0   :  { %v640_v35 = vrot.slane %v639_v32, 4  ;;  %v636_v36 = vpop.f32.mrb[18].mxu0 }
 0x6c1   :  { %v647_v37 = vsel %vm104_vm2, %v646_v33, 0.0  ;;  %v982_v42 = vpop.f32.mrb[19].mxu0 }
 0x6c2   :  { %v641_v43 = vadd.f32 %v640_v35, %v639_v32  ;;  %v648_v44 = vrot.slane %v647_v37, 4 }
 0x6c4   :  { %v642_v45 = vrot.slane %v641_v43, 2  ;;  %v649_v46 = vadd.f32 %v648_v44, %v647_v37  ;;  %v804_v37 = vmul.f32 %v1203_v48, %v1203_v48 }
 0x6c6   :  { %v643_v47 = vadd.f32 %v642_v45, %v641_v43  ;;  %v650_v49 = vrot.slane %v649_v46, 2  ;;  %v805_v42 = vsel %vm104_vm2, %v804_v37, 0.0  ;;  %v781_v45 = vpop.xlane.xlu0 %780 }
 0x6c8   :  { %v644_v5 = vrot.slane %v643_v47, 1  ;;  %v651_v6 = vadd.f32 %v650_v49, %v649_v46 }
 0x6ca   :  { %v645_v50 = vadd.f32 %v644_v5, %v643_v47  ;;  %v652_v1 = vrot.slane %v651_v6, 1 }
 0x6cc   :  { %v653_v7 = vadd.f32 %v652_v1, %v651_v6  ;;  %v654_v51 = vmul.f32 0.125, %v645_v50 }
 0x6ce   :  { %v655_v52 = vmul.f32 0.125, %v653_v7  ;;  %v656_v53 = vmul.f32 %v654_v51, %v654_v51  ;;  %v658_v55 = vsub.f32 %v633_v31, %v654_v51 }
 0x6d0   :  { %v657_v8 = vsub.f32 %v655_v52, %v656_v53 }
 0x6d2   :  { %v659_v54 = vadd.f32 1e-05, %v657_v8 }
 0x6d4   :  { %1031 = vrsqrt.f32 %v659_v54 }
 0x6de   :  { %v1032_v56 = vpop.eup %1031 }
 0x6df   :  { %v661_v57 = vmul.f32 %v1032_v56, %v658_v55 }
 0x6e1   :  { %v662_v58 = vpack.c.bf16 %v661_v57, %v661_v57  ;;  %v782_v59 = vmul.f32 %v661_v57, %v661_v57  ;;  %v774_v61 = vmul.f32 %v661_v57, %v1254_v28 }
 0x6e3   :  { %992 = vmatmul.mubr.msk.bf16.vlgmr.msra.gmra.mrb[12].mxu1 %vm104_vm2, %v662_v58  ;;  %v783_v60 = vsel %vm104_vm2, %v782_v59, 0.0  ;;  %v775_v62 = vsel %vm104_vm2, %v774_v61, 0.0 }
 0x6e4   :  { %784 = vadd.xlane.f32.xlu0 %v783_v60 }
 0x6e8   :  { %776 = vadd.xlane.f32.xlu0 %v775_v62 }
 0x7b6   :  { %v700_v63 = vpop.f32.mrb[12].mxu1 }
 0x7b7   :  { %v706_v3 = vsel %vm380_vm3, %v700_v63, 0.0  ;;  %v713_v4 = vmul.f32 %v700_v63, %v700_v63  ;;  %v993_v14 = vpop.f32.mrb[13].mxu1 }
 0x7b8   :  { %v707_v9 = vrot.slane %v706_v3, 4  ;;  %v703_v10 = vpop.f32.mrb[14].mxu1 }
 0x7b9   :  { %v714_v11 = vsel %vm380_vm3, %v713_v4, 0.0  ;;  %v994_v12 = vpop.f32.mrb[15].mxu1 }
 0x7ba   :  { %v708_v13 = vadd.f32 %v707_v9, %v706_v3  ;;  %v715_v15 = vrot.slane %v714_v11, 4 }
 0x7bc   :  { %v709_v18 = vrot.slane %v708_v13, 2  ;;  %v716_v19 = vadd.f32 %v715_v15, %v714_v11 }
 0x7be   :  { %v710_v20 = vadd.f32 %v709_v18, %v708_v13  ;;  %v717_v28 = vrot.slane %v716_v19, 2 }
 0x7c0   :  { %v711_v16 = vrot.slane %v710_v20, 1  ;;  %v718_v21 = vadd.f32 %v717_v28, %v716_v19 }
 0x7c2   :  { %v712_v22 = vadd.f32 %v711_v16, %v710_v20  ;;  %v719_v23 = vrot.slane %v718_v21, 1 }
 0x7c4   :  { %v720_v17 = vadd.f32 %v719_v23, %v718_v21  ;;  %v721_v24 = vmul.f32 0.125, %v712_v22 }
 0x7c6   :  { %v722_v0 = vmul.f32 0.125, %v720_v17  ;;  %v723_v2 = vmul.f32 %v721_v24, %v721_v24  ;;  %v725_v26 = vsub.f32 %v700_v63, %v721_v24 }
 0x7c8   :  { %v724_v38 = vsub.f32 %v722_v0, %v723_v2 }
 0x7ca   :  { %v726_v25 = vadd.f32 1e-05, %v724_v38 }
 0x7cc   :  { %1033 = vrsqrt.f32 %v726_v25 }
 0x7d6   :  { %v1034_v39 = vpop.eup %1033 }
 0x7d7   :  { %v728_v40 = vmul.f32 %v1034_v39, %v725_v26 }
 0x7d9   :  { %v729_v29 = vmax.f32 %v728_v40, 0.0 }
 0x7db   :  { %v730_v30 = vpack.c.bf16 %v729_v29, %v729_v29 }
 0x7dd   :  { %998 = vmatmul.mubr.msk.bf16.vlgmr.msra.gmra.mrb[20].mxu0 %vm380_vm3, %v730_v30 }
 0x8b0   :  { %v768_v41 = vpop.f32.mrb[20].mxu0 }
 0x8b1   :  { %v769_v31 = vadd.f32 %v768_v41, %v1251_v27  ;;  %v999_v32 = vpop.f32.mrb[21].mxu0  ;;  %v785_v27 = vpop.xlane.xlu0 %784 }
 0x8b2   :  { %v771_v33 = vpop.f32.mrb[22].mxu0  ;;  %v786_v46 = vmul.f32 %v785_v27, %v781_v45 }
 0x8b3   :  { %v1000_v34 = vpop.f32.mrb[23].mxu0  ;;  %v800_v35 = vmul.f32 %v769_v31, %v769_v31  ;;  %v796_v43 = vmul.f32 %v769_v31, %v1203_v48 }
 0x8b4   :  { %v787_v47 = vmax.f32 %v786_v46, 1e-16 }
 0x8b5   :  { %v801_v36 = vsel %vm104_vm2, %v800_v35, 0.0  ;;  %v797_v44 = vsel %vm104_vm2, %v796_v43, 0.0  ;;  %v777_v1 = vpop.xlane.xlu0 %776 }
 0x8b6   :  { %802 = vadd.xlane.f32.xlu1 %v801_v36  ;;  %1035 = vrsqrt.f32 %v787_v47 }
 0x8ba   :  { %806 = vadd.xlane.f32.xlu1 %v805_v42 }
 0x8be   :  { %798 = vadd.xlane.f32.xlu1 %v797_v44 }
 0x8c0   :  { %v1036_v6 = vpop.eup %1035 }
 0x8c1   :  { %v789_v51 = vmul.f32 %v1036_v6, %v777_v1 }
 0x8c3   :  { %v790_v52 = vrot.slane %v789_v51, 4 }
 0x8c5   :  { %v791_v53 = vadd.f32 %v790_v52, %v789_v51 }
 0x8c7   :  { %v792_v54 = vrot.slane %v791_v53, 2 }
 0x8c9   :  { %v793_v57 = vadd.f32 %v792_v54, %v791_v53 }
 0x8cb   :  { %v794_v60 = vrot.slane %v793_v57, 1 }
 0x8cd   :  { %v795_v63 = vadd.f32 %v794_v60, %v793_v57 }
 0x943   :  { %v803_v49 = vpop.xlane.xlu1 %802 }
 0x947   :  { %v807_v5 = vpop.xlane.xlu1 %806 }
 0x948   :  { %v808_v50 = vmul.f32 %v807_v5, %v803_v49 }
 0x94a   :  { %v809_v7 = vmax.f32 %v808_v50, 1e-16 }
 0x94b   :  { %v799_v8 = vpop.xlane.xlu1 %798 }
 0x94c   :  { %1037 = vrsqrt.f32 %v809_v7 }
 0x956   :  { %v1038_v48 = vpop.eup %1037 }
 0x957   :  { %v811_v55 = vmul.f32 %v1038_v48, %v799_v8 }
 0x959   :  { %v812_v56 = vrot.slane %v811_v55, 4 }
 0x95b   :  { %v813_v58 = vadd.f32 %v812_v56, %v811_v55 }
 0x95d   :  { %v814_v59 = vrot.slane %v813_v58, 2 }
 0x95f   :  { %v815_v61 = vadd.f32 %v814_v59, %v813_v58 }
 0x961   :  { %v816_v62 = vrot.slane %v815_v61, 1 }
 0x963   :  { %v817_v3 = vadd.f32 %v816_v62, %v815_v61 }
 0x965   :  { %v818_v4 = vadd.f32 %v817_v3, %v795_v63 }
 0x967   :  { %v819_v14 = vmul.f32 -0.0625, %v818_v4 }
 0x969   :  { %821 = vst.msk [vmem:[#allocation2] sm:$0x1] %vm820_vm4, %v819_v14 }
 0x96a   :  { %1050 = shalt.err (!%p1047_p4)
}
 0x96b   :  { %s1051_s21 = scalar_lea.hbm %s1307_s2, 16 }
 0x96c   :  { %p1052_p5 = scmp.ne.s32.totalorder %s1307_s2, %s1051_s21  ;;  %p1055_p6 = scmp.lt.u32.totalorder %s1051_s21, %s1307_s2 }
 0x96e   :  { %p1057_p7 = pnand %p1055_p6, %p1052_p5 }
 0x970   :  { %1060 = shalt.err (!%p1057_p7)
}
 0x971   :  { %831 = dma.vmem_to_hbm [thread:$0]  %s829_s16, 16, %s1307_s2, [#allocation3]  }
 0x972   :  { %1061 = dma.done.wait [#allocation3], 16  }
 0x973   :  { %1062 = vsyncadd [#allocation3], 4294967280 }
 0x974   :  { %835 = vsyncpa [#allocation3], 1 }

</bundles_post_ra>
